<compile_context>
chip_gen: v7x
topology: tpu7x:2x2x1
jax: 0.10.0
libtpu: 0.0.40
codegen_flags: <defaults>
</compile_context>

<pallas_src>
import jax
import jax.numpy as jnp
from jax.experimental import pallas as pl
from jax.experimental.pallas import tpu as pltpu

IN_DIM = 28 * 28   # 784
H1_DIM = 128
H2_DIM = 64
OUT_DIM = 10
OUT_PAD = 128      # lane-dense padded width for the fc3 output
_LANE = 128
_ROWG = 16         # row granule: covers bf16 sublane packing and the f32 rule


def _round_up(x, m):
    return ((x + m - 1) // m) * m


def _cdiv(a, b):
    return -(-a // b)


# ----------------------------------------------------------------------------- kernel
def _mlp_kernel(x_ref, w1_ref, b1_ref, w2_ref, b2_ref, w3_ref, b3_ref, o_ref):
    # fc1: (TB, 784) @ (784, 128) -> +bias -> ReLU (f32 accumulation on the MXU).
    h1 = jnp.dot(x_ref[...], w1_ref[...], preferred_element_type=jnp.float32)
    h1 = jnp.maximum(h1 + b1_ref[...], 0.0)

    # fc2: (TB, 128) @ (128, 64) -> +bias -> ReLU.
    h2 = jnp.dot(h1.astype(w2_ref.dtype), w2_ref[...],
                 preferred_element_type=jnp.float32)
    h2 = jnp.maximum(h2 + b2_ref[...], 0.0)

    # fc3 (padded to 128 output lanes): (TB, 64) @ (64, 128) -> +bias.
    out = jnp.dot(h2.astype(w3_ref.dtype), w3_ref[...],
                  preferred_element_type=jnp.float32)
    o_ref[...] = (out + b3_ref[...]).astype(o_ref.dtype)


# ----------------------------------------------------------------------------- weight prep (once)
def prepare_params(params, *, use_bf16=True):
    """One-time weight prep, hoisted off the per-call critical path.

    * fc3 is zero-padded to 128 output lanes (padded logits are sliced off in
      the wrapper, so real logits are unchanged).
    * Weights are stored in bf16 (operands only); biases stay f32 since they
      are added to the f32 accumulator on the VPU.
    """
    w1, b1, w2, b2, w3, b3 = params
    cd = jnp.bfloat16 if use_bf16 else jnp.float32
    w3p = jnp.zeros((H2_DIM, OUT_PAD), jnp.float32).at[:, :OUT_DIM].set(w3)
    b3p = jnp.zeros((1, OUT_PAD), jnp.float32).at[:, :OUT_DIM].set(
        jnp.reshape(b3, (1, OUT_DIM)))
    return (w1.astype(cd), jnp.reshape(b1, (1, H1_DIM)).astype(jnp.float32),
            w2.astype(cd), jnp.reshape(b2, (1, H2_DIM)).astype(jnp.float32),
            w3p.astype(cd), b3p)


# ----------------------------------------------------------------------------- tile / VMEM planning
def _plan_tiles(B, tb, min_tiles, compute_dtype, out_dtype, vmem_budget_bytes):
    in_itm = jnp.dtype(compute_dtype).itemsize
    out_itm = jnp.dtype(out_dtype).itemsize
    # x tile occupies 896 lanes (7x128) in VMEM even though IN_DIM=784 in HBM.
    lanes_in = _round_up(IN_DIM, _LANE)
    # Per-row VMEM: double-buffered x stream + double-buffered output slab.
    per_row = 2 * lanes_in * in_itm + 2 * OUT_PAD * out_itm
    # VMEM-resident weights (counted x2 buffers, conservatively) + compiler slack.
    w_bytes = 2 * in_itm * (IN_DIM * H1_DIM
                            + H1_DIM * _round_up(H2_DIM, _LANE)
                            + H2_DIM * OUT_PAD)
    fixed = w_bytes + (4 << 20)

    tb_vmem = max(_ROWG, ((vmem_budget_bytes - fixed) // per_row) // _ROWG * _ROWG)
    tb_cap = max(_ROWG, min(_round_up(tb, _ROWG), tb_vmem))

    B16 = _round_up(max(B, 1), _ROWG)
    # >= min_tiles grid steps (megacore on v7x) and tiles sized to the batch so
    # the final tile carries at most one 16-row granule of padding.
    n_tiles = max(min_tiles, _cdiv(B16, tb_cap))
    TB = min(tb_cap, _round_up(_cdiv(B16, n_tiles), _ROWG))
    n_tiles = _cdiv(B16, TB)
    B_pad = n_tiles * TB

    vmem_limit = int(min(vmem_budget_bytes, max(fixed + TB * per_row, 16 << 20)))
    return TB, n_tiles, B_pad, vmem_limit


# ----------------------------------------------------------------------------- forward wrapper
def mlp_forward(x, params, *, tb=4096, use_bf16=True, out_dtype=None,
                min_tiles=2, vmem_budget_bytes=40 << 20, params_prepared=False):
    """x: (B, 1, 28, 28) or (B, 784). Returns logits (B, 10) in f32.

    tb:       max batch-tile rows (capped by the VMEM budget).
    min_tiles: minimum grid steps (2 -> both v7x TensorCores get work; harmless
               on single-TC v5e/v6e).
    vmem_budget_bytes: tiling/vmem_limit budget; 40 MiB is safe on every
               generation (v7x has 64 MiB physical VMEM per TC).
    """
    prepped = params if params_prepared else prepare_params(params, use_bf16=use_bf16)
    w1k, b1k, w2k, b2k, w3k, b3k = prepped
    compute_dtype = w1k.dtype
    if out_dtype is None:
        out_dtype = compute_dtype  # bf16 writeback by default (halves out traffic)

    x = x.reshape(-1, IN_DIM)
    B = x.shape[0]
    xk = x.astype(compute_dtype)

    TB, n_tiles, B_pad, vmem_limit = _plan_tiles(
        B, tb, min_tiles, compute_dtype, out_dtype, vmem_budget_bytes)
    if B_pad != B:
        xk = jnp.pad(xk, ((0, B_pad - B), (0, 0)))

    # Weights/biases: full-array blocks with constant index maps -> DMA'd once,
    # VMEM-resident across all batch tiles.
    def resident(arr):
        return pl.BlockSpec(arr.shape, lambda i: (0, 0))

    in_itm = jnp.dtype(compute_dtype).itemsize
    w_elems = IN_DIM * H1_DIM + H1_DIM * H2_DIM + H2_DIM * OUT_PAD
    flops = 2 * B_pad * w_elems
    bytes_accessed = (B_pad * IN_DIM * in_itm
                      + w_elems * in_itm
                      + B_pad * OUT_PAD * jnp.dtype(out_dtype).itemsize)

    out = pl.pallas_call(
        _mlp_kernel,
        out_shape=jax.ShapeDtypeStruct((B_pad, OUT_PAD), out_dtype),
        grid_spec=pltpu.PrefetchScalarGridSpec(
            num_scalar_prefetch=0,
            grid=(n_tiles,),
            in_specs=[
                # x streamed tile-by-tile; default double-buffering is already
                # back-to-back on a DMA-throughput-bound pipeline.
                pl.BlockSpec((TB, IN_DIM), lambda i: (i, 0)),
                resident(w1k), resident(b1k),
                resident(w2k), resident(b2k),
                resident(w3k), resident(b3k),
            ],
            out_specs=pl.BlockSpec((TB, OUT_PAD), lambda i: (i, 0)),
        ),
        compiler_params=pltpu.CompilerParams(
            dimension_semantics=("parallel",),     # batch tiles are independent
            vmem_limit_bytes=vmem_limit,           # sized from the actual buffers
        ),
        cost_estimate=pl.CostEstimate(flops=int(flops), transcendentals=0,
                                      bytes_accessed=int(bytes_accessed)),
    )(xk, w1k, b1k, w2k, b2k, w3k, b3k)

    # Slice padded rows/columns off and return f32 logits.
    return out[:B, :OUT_DIM].astype(jnp.float32)


# ----------------------------------------------------------------------------- init / reference
def init_params(key):
    """Deterministic init mirroring nn.Linear shapes (stored as (in, out))."""
    def linear(key, fan_in, fan_out):
        kw, kb = jax.random.split(key)
        bound = 1.0 / jnp.sqrt(fan_in)  # PyTorch default uniform bound
        w = jax.random.uniform(kw, (fan_in, fan_out), jnp.float32, -bound, bound)
        b = jax.random.uniform(kb, (1, fan_out), jnp.float32, -bound, bound)
        return w, b

    k1, k2, k3 = jax.random.split(key, 3)
    w1, b1 = linear(k1, IN_DIM, H1_DIM)
    w2, b2 = linear(k2, H1_DIM, H2_DIM)
    w3, b3 = linear(k3, H2_DIM, OUT_DIM)
    return (w1, b1, w2, b2, w3, b3)


def mlp_reference(x, params):
    """Pure-JAX f32 reference for correctness checking."""
    w1, b1, w2, b2, w3, b3 = params
    x = x.reshape(-1, IN_DIM).astype(jnp.float32)
    h1 = jnp.maximum(x @ w1 + b1, 0.0)
    h2 = jnp.maximum(h1 @ w2 + b2, 0.0)
    return h2 @ w3 + b3


# ----------------------------------------------------------------------------- demo / self-test
if __name__ == "__main__":
    key = jax.random.PRNGKey(0)
    k_params, k_x = jax.random.split(key)

    params = init_params(k_params)
    # Small MNIST-like batch (NCHW); B=30 deliberately not a multiple of 16 to
    # exercise the batch-padding path (and min_tiles=2 -> two grid steps).
    x = jax.random.normal(k_x, (30, 1, 28, 28), dtype=jnp.float32)

    ref = mlp_reference(x, params)

    # f32 operand/output path (prepped once): tight tolerance vs pure-JAX ref.
    prepped_f32 = prepare_params(params, use_bf16=False)
    out_f32 = jax.block_until_ready(
        mlp_forward(x, prepped_f32, params_prepared=True))
    assert out_f32.shape == (30, 10), out_f32.shape
    assert jnp.allclose(out_f32, ref, atol=1e-4, rtol=1e-4), "f32 mismatch"

    # Multi-tile path (tb=16 -> two 16-row tiles) and single-tile path.
    out_tiled = jax.block_until_ready(
        mlp_forward(x, prepped_f32, params_prepared=True, tb=16))
    assert jnp.allclose(out_tiled, ref, atol=1e-4, rtol=1e-4), "tiled mismatch"
    out_single = jax.block_until_ready(
        mlp_forward(x, prepped_f32, params_prepared=True, min_tiles=1))
    assert jnp.allclose(out_single, ref, atol=1e-4, rtol=1e-4), "single-tile mismatch"

    # Default path: bf16 operands + bf16 writeback, f32 MXU accumulation.
    prepped_bf16 = prepare_params(params, use_bf16=True)
    out_bf16 = jax.block_until_ready(
        mlp_forward(x, prepped_bf16, params_prepared=True))
    assert out_bf16.shape == (30, 10), out_bf16.shape
    assert jnp.allclose(out_bf16, ref, atol=6e-2, rtol=6e-2), "bf16 mismatch"

    print("KERNEL_OK")
</pallas_src>

<mosaic_0001>
module attributes {stable_mosaic.version = 11 : i64} {
  func.func @_mlp_kernel(%arg0: i32, %arg1: memref<16x784xf32, #tpu.memory_space<vmem>>, %arg2: memref<784x128xf32, #tpu.memory_space<vmem>>, %arg3: memref<1x128xf32, #tpu.memory_space<vmem>>, %arg4: memref<128x64xf32, #tpu.memory_space<vmem>>, %arg5: memref<1x64xf32, #tpu.memory_space<vmem>>, %arg6: memref<64x128xf32, #tpu.memory_space<vmem>>, %arg7: memref<1x128xf32, #tpu.memory_space<vmem>>, %arg8: memref<16x128xf32, #tpu.memory_space<vmem>>) attributes {dimension_semantics = [#tpu.dimension_semantics<parallel>], iteration_bounds = array<i64: 2>, scalar_prefetch = 0 : i64, scratch_operands = 0 : i64, tpu.core_type = #tpu.core_type<tc>, window_params = [{transform_indices = @transform_0, window_bounds = array<i64: 16, 784>}, {pipeline_mode = #tpu.pipeline_mode<synchronous>, transform_indices = @transform_1, window_bounds = array<i64: 784, 128>}, {pipeline_mode = #tpu.pipeline_mode<synchronous>, transform_indices = @transform_2, window_bounds = array<i64: 1, 128>}, {pipeline_mode = #tpu.pipeline_mode<synchronous>, transform_indices = @transform_3, window_bounds = array<i64: 128, 64>}, {pipeline_mode = #tpu.pipeline_mode<synchronous>, transform_indices = @transform_4, window_bounds = array<i64: 1, 64>}, {pipeline_mode = #tpu.pipeline_mode<synchronous>, transform_indices = @transform_5, window_bounds = array<i64: 64, 128>}, {pipeline_mode = #tpu.pipeline_mode<synchronous>, transform_indices = @transform_6, window_bounds = array<i64: 1, 128>}, {transform_indices = @transform_7, window_bounds = array<i64: 16, 128>}]} {
    %c0 = arith.constant 0 : index
    %c0_0 = arith.constant 0 : index
    %0 = vector.load %arg1[%c0, %c0_0] : memref<16x784xf32, #tpu.memory_space<vmem>>, vector<16x784xf32>
    %c0_1 = arith.constant 0 : index
    %c0_2 = arith.constant 0 : index
    %1 = vector.load %arg2[%c0_1, %c0_2] : memref<784x128xf32, #tpu.memory_space<vmem>>, vector<784x128xf32>
    %cst = arith.constant dense<0.000000e+00> : vector<16x128xf32>
    %2 = tpu.matmul %0, %1, %cst {dimension_numbers = #tpu.dot_dimension_numbers<[1], [0], [0], [1], [0, 0, 1, 1], [], []>} : vector<16x784xf32>, vector<784x128xf32>, vector<16x128xf32> -> vector<16x128xf32>
    %c0_3 = arith.constant 0 : index
    %c0_4 = arith.constant 0 : index
    %3 = vector.load %arg3[%c0_3, %c0_4] : memref<1x128xf32, #tpu.memory_space<vmem>>, vector<1x128xf32>
    %4 = vector.broadcast %3 : vector<1x128xf32> to vector<16x128xf32>
    %5 = arith.addf %2, %4 : vector<16x128xf32>
    %cst_5 = arith.constant 0.000000e+00 : f32
    %6 = vector.broadcast %cst_5 : f32 to vector<16x128xf32>
    %7 = arith.maximumf %5, %6 : vector<16x128xf32>
    %c0_6 = arith.constant 0 : index
    %c0_7 = arith.constant 0 : index
    %8 = vector.load %arg4[%c0_6, %c0_7] : memref<128x64xf32, #tpu.memory_space<vmem>>, vector<128x64xf32>
    %cst_8 = arith.constant dense<0.000000e+00> : vector<16x64xf32>
    %9 = tpu.matmul %7, %8, %cst_8 {dimension_numbers = #tpu.dot_dimension_numbers<[1], [0], [0], [1], [0, 0, 1, 1], [], []>} : vector<16x128xf32>, vector<128x64xf32>, vector<16x64xf32> -> vector<16x64xf32>
    %c0_9 = arith.constant 0 : index
    %c0_10 = arith.constant 0 : index
    %10 = vector.load %arg5[%c0_9, %c0_10] : memref<1x64xf32, #tpu.memory_space<vmem>>, vector<1x64xf32>
    %11 = vector.broadcast %10 : vector<1x64xf32> to vector<16x64xf32>
    %12 = arith.addf %9, %11 : vector<16x64xf32>
    %cst_11 = arith.constant 0.000000e+00 : f32
    %13 = vector.broadcast %cst_11 : f32 to vector<16x64xf32>
    %14 = arith.maximumf %12, %13 : vector<16x64xf32>
    %c0_12 = arith.constant 0 : index
    %c0_13 = arith.constant 0 : index
    %15 = vector.load %arg6[%c0_12, %c0_13] : memref<64x128xf32, #tpu.memory_space<vmem>>, vector<64x128xf32>
    %cst_14 = arith.constant dense<0.000000e+00> : vector<16x128xf32>
    %16 = tpu.matmul %14, %15, %cst_14 {dimension_numbers = #tpu.dot_dimension_numbers<[1], [0], [0], [1], [0, 0, 1, 1], [], []>} : vector<16x64xf32>, vector<64x128xf32>, vector<16x128xf32> -> vector<16x128xf32>
    %c0_15 = arith.constant 0 : index
    %c0_16 = arith.constant 0 : index
    %17 = vector.load %arg7[%c0_15, %c0_16] : memref<1x128xf32, #tpu.memory_space<vmem>>, vector<1x128xf32>
    %18 = vector.broadcast %17 : vector<1x128xf32> to vector<16x128xf32>
    %19 = arith.addf %16, %18 : vector<16x128xf32>
    %c0_17 = arith.constant 0 : index
    %c0_18 = arith.constant 0 : index
    %20 = vector.load %arg8[%c0_17, %c0_18] : memref<16x128xf32, #tpu.memory_space<vmem>>, vector<16x128xf32>
    tpu.vector_store %arg8[%c0_17, %c0_18], %19 {strides = array<i32>} : memref<16x128xf32, #tpu.memory_space<vmem>>, vector<16x128xf32>,
    return
  }
  func.func @transform_0(%arg0: i32) -> (i32, i32) {
    %c0_i32 = arith.constant 0 : i32
    %c0_i32_0 = arith.constant 0 : i32
    return %arg0, %c0_i32 : i32, i32
  }
  func.func @transform_1(%arg0: i32) -> (i32, i32) {
    %c0_i32 = arith.constant 0 : i32
    %c0_i32_0 = arith.constant 0 : i32
    %c0_i32_1 = arith.constant 0 : i32
    return %c0_i32, %c0_i32_0 : i32, i32
  }
  func.func @transform_2(%arg0: i32) -> (i32, i32) {
    %c0_i32 = arith.constant 0 : i32
    %c0_i32_0 = arith.constant 0 : i32
    %c0_i32_1 = arith.constant 0 : i32
    return %c0_i32, %c0_i32_0 : i32, i32
  }
  func.func @transform_3(%arg0: i32) -> (i32, i32) {
    %c0_i32 = arith.constant 0 : i32
    %c0_i32_0 = arith.constant 0 : i32
    %c0_i32_1 = arith.constant 0 : i32
    return %c0_i32, %c0_i32_0 : i32, i32
  }
  func.func @transform_4(%arg0: i32) -> (i32, i32) {
    %c0_i32 = arith.constant 0 : i32
    %c0_i32_0 = arith.constant 0 : i32
    %c0_i32_1 = arith.constant 0 : i32
    return %c0_i32, %c0_i32_0 : i32, i32
  }
  func.func @transform_5(%arg0: i32) -> (i32, i32) {
    %c0_i32 = arith.constant 0 : i32
    %c0_i32_0 = arith.constant 0 : i32
    %c0_i32_1 = arith.constant 0 : i32
    return %c0_i32, %c0_i32_0 : i32, i32
  }
  func.func @transform_6(%arg0: i32) -> (i32, i32) {
    %c0_i32 = arith.constant 0 : i32
    %c0_i32_0 = arith.constant 0 : i32
    %c0_i32_1 = arith.constant 0 : i32
    return %c0_i32, %c0_i32_0 : i32, i32
  }
  func.func @transform_7(%arg0: i32) -> (i32, i32) {
    %c0_i32 = arith.constant 0 : i32
    %c0_i32_0 = arith.constant 0 : i32
    return %arg0, %c0_i32 : i32, i32
  }
}

</mosaic_0001>

<bundles_post_ra>
// kernel: tpu_custom_call.1
= control target key start
LH: loop header
LB: loop body
LE: loop exit
PB: predicated region body
PF: predicated region fallthrough
CT: control target
= control target key end

     0   :  { %s1961_s0 = inlined_call_operand.hbm [shape: f32[32,784], index: 0, kind: input, shape index: {}]   ;;  %s1962_s1 = inlined_call_operand.hbm [shape: f32[784,128], index: 1, kind: input, shape index: {}]   ;;  %s1963_s2 = inlined_call_operand.vmem [shape: f32[1,128], index: 2, kind: input, shape index: {}]   ;;  %s1964_s3 = inlined_call_operand.vmem [shape: f32[128,64], index: 3, kind: input, shape index: {}]   ;;  %s1965_s4 = inlined_call_operand.vmem [shape: f32[1,64], index: 4, kind: input, shape index: {}]   ;;  %s1966_s5 = inlined_call_operand.vmem [shape: f32[64,128], index: 5, kind: input, shape index: {}]   ;;  %s1967_s6 = inlined_call_operand.vmem [shape: f32[1,128], index: 6, kind: input, shape index: {}]   ;;  %s1968_s7 = inlined_call_operand.hbm [shape: f32[32,128], index: 7, kind: output, shape index: {}]  }
   0x1   :  { %1972 = sst [smem:[#allocation11_spill]] %s1962_s1 }
   0x2   :  { %12 = vsyncpa [#allocation3], 0 }
   0x3   :  { %14 = vsyncpa [#allocation3 + $0x1], 0 }
   0x4   :  { %15 = vsyncpa [#allocation6], 0 }
   0x5   :  { %16 = vsyncpa [#allocation4], 0 }
   0x6   :  { %18 = vsyncpa [#allocation4 + $0x1], 0  ;;  %s1662_s24 = smov 0   ;;  %s1664_s25 = smov 0  }
   0x7   :  { %s1666_s26 = smov 0   ;;  %s1668_s27 = smov 0  }
   0x8 LB: > { %s1683_s28 = sadd.s32 4294967295, %s1611_s27   ;;  %s1039_s29 = sadd.s32 4294967294, %s1611_s27   ;;  %s1611_s27 = sphi %s1668_s27, %s1990_s27   ;;  %s1607_s26 = sphi %s1666_s26, %s1989_s26   ;;  %s1603_s25 = sphi %s1664_s25, %s1988_s25   ;;  %s1599_s24 = sphi %s1662_s24, %s1987_s24  }
   0x9   : > { %p44_p0 = scmp.ne.s32.totalorder %s1603_s25, %s1599_s24  ;;  %p1969_p1 = scmp.eq.s32.totalorder %s1683_s28, 0 }
   0xa   : > { %p200_p3 = scmp.eq.s32.totalorder %s1039_s29, 1  ;;  %p1040_p5 = scmp.ge.s32.totalorder %s1611_s27, 1 }
   0xb   : > { %p1692_p4 = por %p1969_p1, %p44_p0  ;;  %p207_p7 = scmp.lt.s32.totalorder %s1611_s27, 3 }
   0xc   : > { %p1697_p6 = por %p200_p3, %p44_p0  ;;  %s1613_s10 = smov [#allocation5]  }
   0xd   : > { %s1973_s30 = scalar_select %p1692_p4, 1, 0 }
   0xe   : > { %s1974_s8 = scalar_select %p1697_p6, 1, 0 }
   0xf   : > { %p1702_p8 = pnand %p1040_p5, %p207_p7  ;;  %s219_s11 = sshll.u32 %s1613_s10, 4  ;;  %s1706_s11 = int_to_ptr.vmem [resolvable:$true] %s219_s11 }
  0x10   : > { %s1718_s13 = sadd.s32 1, %s1611_s27   ;;  %s31_s14 = sadd.s32 1, %s1607_s26 }
  0x11   : > { %s1975_s9 = scalar_select %p1702_p8, 1, 0 }
  0x12   : > { %p1428_p9 = pneg %p1702_p8  ;;  %s28_s15 = ssub.s32 %s1611_s27, %s1718_s13 }
  0x13   : > { %s1977_s1 = sld [smem:[#allocation11_spill]] }
  0x14   : > { %p1713_p11 = pnand %p1428_p9, %p1969_p1 }
  0x16   : > { %p1485_p13 = pneg %p1713_p11 }
  0x19   : > { %s1483_s18 = scalar_lea.hbm %s1977_s1, 12544 }
  0x1a   : > { %p1484_p12 = scmp.ne.s32.totalorder %s1977_s1, %s1483_s18  ;;  %p1490_p5 = scmp.lt.u32.totalorder %s1483_s18, %s1977_s1 }
  0x1c   : > { %p1486_p0 = pnand %p1485_p13, %p1484_p12 }
  0x1e   : > { %p1487_p3 = pneg %p1486_p0 }
  0x20   : > { %p1492_p7 = pnand %p1490_p5, %p1487_p3 }
  0x22   : > { %1495 = shalt.err (!%p1492_p7)
}
  0x23   : > { %s1496_s23 = scalar_lea.vmem %s1706_s11, 12544  ;;  %p1504_p2 = scmp.lt.s32.totalorder %s1706_s11, %s1706_s11 }
  0x24   : > { %p1497_p9 = scmp.ne.s32.totalorder %s1706_s11, %s1496_s23  ;;  %p1505_p6 = scmp.lt.s32.totalorder %s1496_s23, %s1496_s23 }
  0x26   : > { %p1499_p10 = pnand %p1497_p9, %p1485_p13  ;;  %p1506_p4 = por %p1505_p6, %p1504_p2 }
  0x28   : > { %p1500_p1 = pneg %p1499_p10 }
  0x2a   : > { %p1507_p8 = pnand %p1506_p4, %p1500_p1 }
  0x2c   : > { %1510 = shalt.err (!%p1507_p8)
}
  0x2d   : > { %s1614_s29 = smov 128   ;;  %s1615_s10 = smov 8  }
  0x2e   : > { %1431 = dma.hbm_to_vmem [thread:$0]  (!%p1713_p11), %s1977_s1, 12544, %s1706_s11, [#allocation6], %s1614_s29, %s1614_s29, %s1615_s10  }
  0x2f   : > { %p29_p2 = scmp.eq.s32.totalorder %s28_s15, 0  ;;  %p38_p1 = scmp.ne.s32.totalorder %s1607_s26, %s1603_s25 }
  0x30   : > { %p39_p4 = scmp.eq.s32.totalorder %s1611_s27, 0  ;;  %p1441_p6 = scmp.lt.s32.totalorder %s1611_s27, 2 }
  0x31   : > { %s1749_s18 = scalar_select %p29_p2, %s1607_s26, %s31_s14  }
  0x32   : > { %p40_p8 = por %p39_p4, %p38_p1  ;;  %p1978_p10 = scmp.eq.s32.totalorder %s1683_s28, 1 }
  0x33   : > { %s248_s20 = sand.u32 1, %s1607_s26   ;;  %s1418_s21 = smul.u32 1792, %s1611_s27 }
  0x34   : > { %p1753_p12 = por %p1978_p10, %p38_p1  ;;  %s1417_s22 = smul.u32 112, %s248_s20 }
  0x35   : > { %s1762_s16 = scalar_lea.hbm %s1961_s0, %s1418_s21  ;;  %p1764_p11 = pnand %p1441_p6, %p40_p8 }
  0x36   : > { %s252_s14 = scalar_lea.vmem [#allocation2], %s1417_s22  ;;  %s1770_s29 = scalar_lea.sflag [#allocation3], %s248_s20 }
  0x37   : > { %s260_s15 = sshll.u32 %s252_s14, 4  ;;  %s1511_s10 = scalar_lea.hbm %s1762_s16, 1792  ;;  %s1768_s15 = int_to_ptr.vmem [resolvable:$true] %s260_s15 }
  0x38   : > { %p1512_p13 = scmp.ne.s32.totalorder %s1762_s16, %s1511_s10  ;;  %p1513_p0 = pneg %p1764_p11 }
  0x39   : > { %s1516_s12 = scalar_lea.hbm %s1961_s0, 3584  ;;  %p1517_p7 = scmp.lt.u32.totalorder %s1762_s16, %s1961_s0 }
  0x3a   : > { %p1514_p3 = pnand %p1513_p0, %p1512_p13  ;;  %p1518_p9 = scmp.lt.u32.totalorder %s1516_s12, %s1511_s10 }
  0x3b   : > { %p1520_p1 = scmp.lt.u32.totalorder %s1511_s10, %s1762_s16 }
  0x3c   : > { %p1515_p5 = pneg %p1514_p3  ;;  %p1519_p2 = por %p1518_p9, %p1517_p7 }
  0x3e   : > { %p1521_p4 = por %p1520_p1, %p1519_p2 }
  0x40   : > { %p1522_p6 = pnand %p1521_p4, %p1515_p5 }
  0x42   : > { %1525 = shalt.err (!%p1522_p6)
}
  0x43   : > { %s1526_s20 = scalar_lea.vmem %s1768_s15, 1792  ;;  %s1616_s22 = smov [#allocation2]  }
  0x44   : > { %p1527_p8 = scmp.ne.s32.totalorder %s1768_s15, %s1526_s20  ;;  %s1531_s14 = sshll.u32 %s1616_s22, 4  ;;  %s1532_s14 = int_to_ptr.vmem [resolvable:$false] %s1531_s14 }
  0x45   : > { %s1533_s1 = scalar_lea.vmem %s1532_s14, 3584  ;;  %p1534_p3 = scmp.lt.s32.totalorder %s1768_s15, %s1532_s14 }
  0x46   : > { %p1529_p10 = pnand %p1527_p8, %p1513_p0  ;;  %p1535_p7 = scmp.lt.s32.totalorder %s1533_s1, %s1526_s20 }
  0x48   : > { %p1530_p13 = pneg %p1529_p10  ;;  %p1536_p9 = por %p1535_p7, %p1534_p3 }
  0x4a   : > { %p1537_p2 = pnand %p1536_p9, %p1530_p13 }
  0x4c   : > { %1540 = shalt.err (!%p1537_p2)
}
  0x4d   : > { %s1617_s10 = smov 896   ;;  %s1618_s17 = smov 56  }
  0x4e   : > { %1435 = dma.hbm_to_vmem [thread:$0]  (!%p1764_p11), %s1762_s16, 1792, %s1768_s15, %s1770_s29, %s1617_s10, %s1617_s10, %s1618_s17  }
  0x4f   : > { %p1981_p0 = scmp.ne.s32.totalorder %s1975_s9, 0 }
  0x50   : > { %s1801_s21 = sand.u32 (!%p1981_p0), 1, %s1603_s25   ;;  %p1982_p5 = scmp.ne.s32.totalorder (!%p1981_p0), %s1973_s30, 0 }
  0x51   : > { %272 = sbr.rel (%p1981_p0) target bundleno = 832 (0x340), region = 48  ;;  %s275_s23 = scalar_lea.sflag (!%p1981_p0), [#allocation3], %s1801_s21 }
  0x52   : > { %s1419_s12 = smul.u32 (!%p1981_p0), 112, %s1801_s21 }
  0x54   : > { %s1805_s20 = scalar_lea.vmem (!%p1981_p0), [#allocation2], %s1419_s12 }
  0x58   : > { %1586 = dma.done.wait (%p1982_p5), %s275_s23, 1792  }
  0x59   : > { %1588 = vsyncadd (%p1982_p5), %s275_s23, 4294965504  ;;  %p1983_p11 = scmp.eq.s32.totalorder %s1683_s28, 0 }
  0x5b   : > { %1590 = dma.done.wait (%p1983_p11), [#allocation6], 12544   ;;  %p1984_p1 = pmov %p1983_p11 }
  0x5c   : > { %v345_v0 = vld [vmem:[#allocation5 + $0x80] sm:$0xff]  ;;  %v346_v1 = vld [vmem:[#allocation5 + $0x88] sm:$0xff]  ;;  %v347_v11 = vld [vmem:[#allocation5 + $0x90] sm:$0xff]  ;;  %vm434_vm0 = vcmask 130048   ;;  %vm858_vm1 = vcmask 523264   ;;  %s1048_s17 = sshll.u32 %s1801_s21, 4 }
  0x5d   : > { %1592 = vsyncadd (%p1984_p1), [#allocation6], 4294954752  ;;  %v329_v2 = vld [vmem:[#allocation5] sm:$0xff]  ;;  %v1269_v3 = vpack.c.bf16 %v346_v1, %v345_v0  ;;  %v330_v4 = vld [vmem:[#allocation5 + $0x8] sm:$0xff]  ;;  %s312_s12 = scalar_lea.vmem [#allocation7], %s1048_s17  ;;  %s1061_s9 = sshll.u32 %s1683_s28, 8 }
  0x5e   : > { %v377_v5 = vld [vmem:[#allocation5 + $0x180] sm:$0xff]  ;;  %v378_v6 = vld [vmem:[#allocation5 + $0x188] sm:$0xff]  ;;  %v1271_v7 = vpack.c.bf16 %v330_v4, %v329_v2  ;;  %v348_v13 = vld [vmem:[#allocation5 + $0x98] sm:$0xff]  ;;  %s956_s23 = sshll.u32 %s312_s12, 4  ;;  %s1917_s15 = scalar_lea.hbm %s1968_s7, %s1061_s9  ;;  %s1912_s23 = int_to_ptr.vmem [resolvable:$true] %s956_s23 }
  0x5f   : > { %v1301_v8 = vpack.c.bf16 %v378_v6, %v377_v5  ;;  %v361_v9 = vld [vmem:[#allocation5 + $0x100] sm:$0xff]  ;;  %v362_v10 = vld [vmem:[#allocation5 + $0x108] sm:$0xff]  ;;  %1270 = vmatprep.subr.bf16.mxu0 %v1269_v3  ;;  %v331_v14 = vld [vmem:[#allocation5 + $0x10] sm:$0xff]  ;;  %v1273_v16 = vpack.c.bf16 %v348_v13, %v347_v11  ;;  %s943_s29 = scalar_lea.sflag [#allocation4], %s1801_s21  ;;  %s1541_s22 = scalar_lea.vmem %s1912_s23, 256 }
  0x60   : > { %v1303_v12 = vpack.c.bf16 %v362_v10, %v361_v9  ;;  %v332_v15 = vld [vmem:[#allocation5 + $0x18] sm:$0xff]  ;;  %1272 = vmatpush3.bf16.msra.mxu0 %v1271_v7  ;;  %v379_v18 = vld [vmem:[#allocation5 + $0x190] sm:$0xff]  ;;  %v349_v23 = vld [vmem:[#allocation5 + $0xa0] sm:$0xff]  ;;  %p1542_p4 = scmp.ne.s32.totalorder %s1912_s23, %s1541_s22  ;;  %s1619_s28 = smov [#allocation7]  }
  0x61   : > { %1302 = vmatprep.subr.bf16.mxu1 %v1301_v8  ;;  %v1275_v17 = vpack.c.bf16 %v332_v15, %v331_v14  ;;  %v380_v19 = vld [vmem:[#allocation5 + $0x198] sm:$0xff]  ;;  %v363_v20 = vld [vmem:[#allocation5 + $0x110] sm:$0xff]  ;;  %v350_v24 = vld [vmem:[#allocation5 + $0xa8] sm:$0xff]  ;;  %1274 = vmatprep.subr.bf16.mxu0 %v1273_v16  ;;  %s1545_s14 = sshll.u32 %s1619_s28, 4  ;;  %s1546_s14 = int_to_ptr.vmem [resolvable:$false] %s1545_s14 }
  0x62   : > { %1304 = vmatpush3.bf16.msra.mxu1 %v1303_v12  ;;  %v1305_v21 = vpack.c.bf16 %v380_v19, %v379_v18  ;;  %v364_v22 = vld [vmem:[#allocation5 + $0x118] sm:$0xff]  ;;  %v1277_v26 = vpack.c.bf16 %v350_v24, %v349_v23  ;;  %v333_v27 = vld [vmem:[#allocation5 + $0x20] sm:$0xff]  ;;  %v334_v28 = vld [vmem:[#allocation5 + $0x28] sm:$0xff]  ;;  %p1543_p6 = pnand %p1542_p4, %p1753_p12  ;;  %s1547_s1 = scalar_lea.vmem %s1546_s14, 512 }
  0x63   : > { %v1307_v25 = vpack.c.bf16 %v364_v22, %v363_v20  ;;  %v381_v29 = vld [vmem:[#allocation5 + $0x1a0] sm:$0xff]  ;;  %v382_v30 = vld [vmem:[#allocation5 + $0x1a8] sm:$0xff]  ;;  %v1279_v33 = vpack.c.bf16 %v334_v28, %v333_v27  ;;  %v351_v35 = vld [vmem:[#allocation5 + $0xb0] sm:$0xff]  ;;  %p1548_p10 = scmp.lt.s32.totalorder %s1912_s23, %s1546_s14  ;;  %p1549_p13 = scmp.lt.s32.totalorder %s1547_s1, %s1541_s22 }
  0x64   : > { %1306 = vmatprep.subr.bf16.mxu1 %v1305_v21  ;;  %v365_v31 = vld [vmem:[#allocation5 + $0x120] sm:$0xff]  ;;  %v366_v32 = vld [vmem:[#allocation5 + $0x128] sm:$0xff]  ;;  %1276 = vmatpush3.bf16.msra.mxu0 %v1275_v17  ;;  %v1309_v34 = vpack.c.bf16 %v382_v30, %v381_v29  ;;  %v352_v36 = vld [vmem:[#allocation5 + $0xb8] sm:$0xff]  ;;  %p1544_p8 = pneg %p1543_p6 }
  0x65   : > { %v335_v37 = vld [vmem:[#allocation5 + $0x30] sm:$0xff]  ;;  %1278 = vmatprep.subr.bf16.mxu0 %v1277_v26  ;;  %v1311_v38 = vpack.c.bf16 %v366_v32, %v365_v31  ;;  %v1281_v39 = vpack.c.bf16 %v352_v36, %v351_v35  ;;  %v336_v40 = vld [vmem:[#allocation5 + $0x38] sm:$0xff]  ;;  %v353_v46 = vld [vmem:[#allocation5 + $0xc0] sm:$0xff]  ;;  %p1550_p3 = por %p1549_p13, %p1548_p10 }
  0x66   : > { %1308 = vmatpush3.bf16.msra.mxu1 %v1307_v25  ;;  %v383_v41 = vld [vmem:[#allocation5 + $0x1b0] sm:$0xff]  ;;  %v384_v42 = vld [vmem:[#allocation5 + $0x1b8] sm:$0xff]  ;;  %v354_v47 = vld [vmem:[#allocation5 + $0xc8] sm:$0xff]  ;;  %v1283_v48 = vpack.c.bf16 %v336_v40, %v335_v37 }
  0x67   : > { %1310 = vmatprep.subr.bf16.mxu1 %v1309_v34  ;;  %v1313_v43 = vpack.c.bf16 %v384_v42, %v383_v41  ;;  %v367_v44 = vld [vmem:[#allocation5 + $0x130] sm:$0xff]  ;;  %v368_v45 = vld [vmem:[#allocation5 + $0x138] sm:$0xff]  ;;  %v385_v49 = vld [vmem:[#allocation5 + $0x1c0] sm:$0xff]  ;;  %v1285_v52 = vpack.c.bf16 %v354_v47, %v353_v46  ;;  %p1551_p7 = pnand %p1550_p3, %p1544_p8 }
  0x68   : > { %1280 = vmatpush3.bf16.msra.mxu0 %v1279_v33  ;;  %v386_v50 = vld [vmem:[#allocation5 + $0x1c8] sm:$0xff]  ;;  %v1315_v51 = vpack.c.bf16 %v368_v45, %v367_v44  ;;  %v337_v53 = vld [vmem:[#allocation5 + $0x40] sm:$0xff]  ;;  %v355_v58 = vld [vmem:[#allocation5 + $0xd0] sm:$0xff] }
  0x69   : > { %1282 = vmatprep.subr.bf16.mxu0 %v1281_v39  ;;  %v338_v54 = vld [vmem:[#allocation5 + $0x48] sm:$0xff]  ;;  %v369_v55 = vld [vmem:[#allocation5 + $0x140] sm:$0xff]  ;;  %v1317_v56 = vpack.c.bf16 %v386_v50, %v385_v49  ;;  %v356_v59 = vld [vmem:[#allocation5 + $0xd8] sm:$0xff] }
  0x6a   : > { %1312 = vmatpush3.bf16.msra.mxu1 %v1311_v38  ;;  %v370_v57 = vld [vmem:[#allocation5 + $0x148] sm:$0xff]  ;;  %v387_v60 = vld [vmem:[#allocation5 + $0x1d0] sm:$0xff]  ;;  %v388_v61 = vld [vmem:[#allocation5 + $0x1d8] sm:$0xff]  ;;  %v1287_v62 = vpack.c.bf16 %v338_v54, %v337_v53  ;;  %v1289_v0 = vpack.c.bf16 %v356_v59, %v355_v58 }
  0x6b   : > { %1314 = vmatprep.subr.bf16.mxu1 %v1313_v43  ;;  %v1319_v63 = vpack.c.bf16 %v370_v57, %v369_v55  ;;  %v339_v1 = vld [vmem:[#allocation5 + $0x50] sm:$0xff]  ;;  %v340_v2 = vld [vmem:[#allocation5 + $0x58] sm:$0xff]  ;;  %v1321_v4 = vpack.c.bf16 %v388_v61, %v387_v60  ;;  %v357_v6 = vld [vmem:[#allocation5 + $0xe0] sm:$0xff] }
  0x6c   : > { %1284 = vmatpush3.bf16.msra.mxu0 %v1283_v48  ;;  %v371_v3 = vld [vmem:[#allocation5 + $0x150] sm:$0xff]  ;;  %v372_v5 = vld [vmem:[#allocation5 + $0x158] sm:$0xff]  ;;  %v358_v7 = vld [vmem:[#allocation5 + $0xe8] sm:$0xff]  ;;  %v1291_v10 = vpack.c.bf16 %v340_v2, %v339_v1 }
  0x6d   : > { %1286 = vmatprep.subr.bf16.mxu0 %v1285_v52  ;;  %v389_v8 = vld [vmem:[#allocation5 + $0x1e0] sm:$0xff]  ;;  %v390_v9 = vld [vmem:[#allocation5 + $0x1e8] sm:$0xff]  ;;  %v1323_v13 = vpack.c.bf16 %v372_v5, %v371_v3  ;;  %v1293_v14 = vpack.c.bf16 %v358_v7, %v357_v6  ;;  %v359_v19 = vld [vmem:[#allocation5 + $0xf0] sm:$0xff] }
  0x6e   : > { %1316 = vmatpush3.bf16.msra.mxu1 %v1315_v51  ;;  %v341_v11 = vld [vmem:[#allocation5 + $0x60] sm:$0xff]  ;;  %v316_v12 = vld [vmem:[%s1805_s20 + $0x8] sm:$0xff]  ;;  %v1325_v18 = vpack.c.bf16 %v390_v9, %v389_v8  ;;  %v318_v21 = vld [vmem:[%s1805_s20 + $0x18] sm:$0xff] }
  0x6f   : > { %1318 = vmatprep.subr.bf16.mxu1 %v1317_v56  ;;  %v342_v15 = vld [vmem:[#allocation5 + $0x68] sm:$0xff]  ;;  %v373_v16 = vld [vmem:[#allocation5 + $0x160] sm:$0xff]  ;;  %v360_v20 = vld [vmem:[#allocation5 + $0xf8] sm:$0xff]  ;;  %505 = vmatprep.mubr.f32.mxu0 %v316_v12 }
  0x70   : > { %1288 = vmatpush3.bf16.msra.mxu0 %v1287_v62  ;;  %v374_v17 = vld [vmem:[#allocation5 + $0x168] sm:$0xff]  ;;  %v391_v22 = vld [vmem:[#allocation5 + $0x1f0] sm:$0xff]  ;;  %v392_v23 = vld [vmem:[#allocation5 + $0x1f8] sm:$0xff]  ;;  %580 = vmatprep.mubr.f32.mxu1 %v318_v21  ;;  %v1295_v24 = vpack.c.bf16 %v342_v15, %v341_v11  ;;  %v1297_v26 = vpack.c.bf16 %v360_v20, %v359_v19 }
  0x71   : > { %1290 = vmatprep.subr.bf16.mxu0 %v1289_v0  ;;  %v1327_v25 = vpack.c.bf16 %v374_v17, %v373_v16  ;;  %v343_v27 = vld [vmem:[#allocation5 + $0x70] sm:$0xff]  ;;  %v344_v28 = vld [vmem:[#allocation5 + $0x78] sm:$0xff]  ;;  %v1329_v30 = vpack.c.bf16 %v392_v23, %v391_v22  ;;  %v409_v32 = vld [vmem:[#allocation5 + $0x280] sm:$0xff] }
  0x72   : > { %1320 = vmatpush3.bf16.msra.mxu1 %v1319_v63  ;;  %v375_v29 = vld [vmem:[#allocation5 + $0x170] sm:$0xff]  ;;  %v376_v31 = vld [vmem:[#allocation5 + $0x178] sm:$0xff]  ;;  %v410_v33 = vld [vmem:[#allocation5 + $0x288] sm:$0xff]  ;;  %v1299_v34 = vpack.c.bf16 %v344_v28, %v343_v27 }
  0x73   : > { %1322 = vmatprep.subr.bf16.mxu1 %v1321_v4  ;;  %v1331_v35 = vpack.c.bf16 %v376_v31, %v375_v29  ;;  %v1333_v36 = vpack.c.bf16 %v410_v33, %v409_v32  ;;  %v393_v37 = vld [vmem:[#allocation5 + $0x200] sm:$0xff]  ;;  %v394_v38 = vld [vmem:[#allocation5 + $0x208] sm:$0xff]  ;;  %v411_v39 = vld [vmem:[#allocation5 + $0x290] sm:$0xff] }
  0x74   : > { %1292 = vmatpush3.bf16.msra.mxu0 %v1291_v10  ;;  %v412_v40 = vld [vmem:[#allocation5 + $0x298] sm:$0xff]  ;;  %v315_v41 = vld [vmem:[%s1805_s20] sm:$0xff]  ;;  %v1335_v42 = vpack.c.bf16 %v394_v38, %v393_v37  ;;  %v317_v43 = vld [vmem:[%s1805_s20 + $0x10] sm:$0xff] }
  0x75   : > { %1294 = vmatprep.subr.bf16.mxu0 %v1293_v14  ;;  %v1337_v44 = vpack.c.bf16 %v412_v40, %v411_v39  ;;  %v395_v45 = vld [vmem:[#allocation5 + $0x210] sm:$0xff]  ;;  %v396_v46 = vld [vmem:[#allocation5 + $0x218] sm:$0xff]  ;;  %v413_v47 = vld [vmem:[#allocation5 + $0x2a0] sm:$0xff] }
  0x76   : > { %1324 = vmatpush3.bf16.msra.mxu1 %v1323_v13  ;;  %v414_v48 = vld [vmem:[#allocation5 + $0x2a8] sm:$0xff]  ;;  %v323_v49 = vld [vmem:[%s1805_s20 + $0x40] sm:$0xff]  ;;  %v325_v51 = vld [vmem:[%s1805_s20 + $0x50] sm:$0xff]  ;;  %v1339_v53 = vpack.c.bf16 %v396_v46, %v395_v45 }
  0x77   : > { %1326 = vmatprep.subr.bf16.mxu1 %v1325_v18  ;;  %v425_v50 = vld [vmem:[#allocation5 + $0x300] sm:$0xff]  ;;  %v426_v52 = vld [vmem:[#allocation5 + $0x308] sm:$0xff]  ;;  %v1341_v56 = vpack.c.bf16 %v414_v48, %v413_v47  ;;  %v415_v60 = vld [vmem:[#allocation5 + $0x2b0] sm:$0xff] }
  0x78   : > { %1296 = vmatpush3.bf16.msra.mxu0 %v1295_v24  ;;  %v322_v54 = vld [vmem:[%s1805_s20 + $0x38] sm:$0xff]  ;;  %v1365_v55 = vpack.c.bf16 %v426_v52, %v425_v50  ;;  %v397_v57 = vld [vmem:[#allocation5 + $0x220] sm:$0xff]  ;;  %v324_v59 = vld [vmem:[%s1805_s20 + $0x48] sm:$0xff] }
  0x79   : > { %1298 = vmatprep.subr.bf16.mxu0 %v1297_v26  ;;  %v398_v58 = vld [vmem:[#allocation5 + $0x228] sm:$0xff]  ;;  %v416_v61 = vld [vmem:[#allocation5 + $0x2b8] sm:$0xff]  ;;  %v321_v63 = vld [vmem:[%s1805_s20 + $0x30] sm:$0xff] }
  0x7a   : > { %1328 = vmatpush3.bf16.msra.mxu1 %v1327_v25  ;;  %v320_v62 = vld [vmem:[%s1805_s20 + $0x28] sm:$0xff]  ;;  %v1343_v0 = vpack.c.bf16 %v398_v58, %v397_v57  ;;  %v1345_v1 = vpack.c.bf16 %v416_v61, %v415_v60  ;;  %v399_v2 = vld [vmem:[#allocation5 + $0x230] sm:$0xff]  ;;  %v417_v5 = vld [vmem:[#allocation5 + $0x2c0] sm:$0xff] }
  0x7b   : > { %1330 = vmatprep.subr.bf16.mxu1 %v1329_v30  ;;  %v400_v3 = vld [vmem:[#allocation5 + $0x238] sm:$0xff]  ;;  %v418_v6 = vld [vmem:[#allocation5 + $0x2c8] sm:$0xff]  ;;  %v401_v9 = vld [vmem:[#allocation5 + $0x240] sm:$0xff] }
  0x7c   : > { %1300 = vmatpush3.bf16.msra.mxu0 %v1299_v34  ;;  %v328_v4 = vld [vmem:[%s1805_s20 + $0x68] sm:$0xff]  ;;  %v1347_v7 = vpack.c.bf16 %v400_v3, %v399_v2  ;;  %v1349_v8 = vpack.c.bf16 %v418_v6, %v417_v5  ;;  %v419_v11 = vld [vmem:[#allocation5 + $0x2d0] sm:$0xff]  ;;  %v421_v17 = vld [vmem:[#allocation5 + $0x2e0] sm:$0xff] }
  0x7d   : > { %1334 = vmatprep.subr.bf16.mxu0 %v1333_v36  ;;  %v402_v10 = vld [vmem:[#allocation5 + $0x248] sm:$0xff]  ;;  %v420_v12 = vld [vmem:[#allocation5 + $0x2d8] sm:$0xff]  ;;  %v403_v15 = vld [vmem:[#allocation5 + $0x250] sm:$0xff] }
  0x7e   : > { %1332 = vmatpush3.bf16.msra.mxu1 %v1331_v35  ;;  %v1351_v13 = vpack.c.bf16 %v402_v10, %v401_v9  ;;  %v1353_v14 = vpack.c.bf16 %v420_v12, %v419_v11  ;;  %v404_v16 = vld [vmem:[#allocation5 + $0x258] sm:$0xff]  ;;  %v422_v18 = vld [vmem:[#allocation5 + $0x2e8] sm:$0xff]  ;;  %v405_v21 = vld [vmem:[#allocation5 + $0x260] sm:$0xff] }
  0x7f   : > { %506 = vmatmul.mubr.f32.vlgmr.msra.gmra.mrb[0].mxu0 %v315_v41  ;;  %1366 = vmatprep.subr.bf16.mxu1 %v1365_v55  ;;  %v1355_v19 = vpack.c.bf16 %v404_v16, %v403_v15  ;;  %v1357_v20 = vpack.c.bf16 %v422_v18, %v421_v17  ;;  %v406_v22 = vld [vmem:[#allocation5 + $0x268] sm:$0xff]  ;;  %v423_v23 = vld [vmem:[#allocation5 + $0x2f0] sm:$0xff]  ;;  %v424_v24 = vld [vmem:[#allocation5 + $0x2f8] sm:$0xff] }
  0x80   : > { %1336 = vmatpush3.bf16.msra.mxu0 %v1335_v42  ;;  %510 = vmatprep.mubr.f32.mxu0 %v323_v49  ;;  %v1359_v25 = vpack.c.bf16 %v406_v22, %v405_v21  ;;  %v1361_v26 = vpack.c.bf16 %v424_v24, %v423_v23  ;;  %v407_v27 = vld [vmem:[#allocation5 + $0x270] sm:$0xff]  ;;  %v408_v28 = vld [vmem:[#allocation5 + $0x278] sm:$0xff]  ;;  %v743_v33 = vld [vmem:[%s1964_s3] sm:$0xff] }
  0x81   : > { %581 = vmatmul.mubr.f32.vlgmr.msra.gmra.mrb[0].mxu1 %v317_v43  ;;  %1338 = vmatprep.subr.bf16.mxu0 %v1337_v44  ;;  %v1363_v29 = vpack.c.bf16 %v408_v28, %v407_v27  ;;  %v319_v30 = vld [vmem:[%s1805_s20 + $0x20] sm:$0xff]  ;;  %v326_v32 = vld [vmem:[%s1805_s20 + $0x58] sm:$0xff] }
  0x82   : > { %585 = vmatprep.mubr.f32.mxu1 %v325_v51  ;;  %1368 = vmatpush3.bf16.msra.mxu1 %v1365_v55  ;;  %v327_v31 = vld [vmem:[%s1805_s20 + $0x60] sm:$0xff]  ;;  %v744_v34 = vld [vmem:[%s1964_s3 + $0x8] sm:$0xff]  ;;  %v746_v37 = vld [vmem:[%s1964_s3 + $0x18] sm:$0xff] }
  0x83   : > { %511 = vmatmul.mubr.f32.gmra.mrb[2].mxu0 %v322_v54  ;;  %v745_v35 = vld [vmem:[%s1964_s3 + $0x10] sm:$0xff]  ;;  %v1369_v36 = vpack.c.bf16 %v744_v34, %v743_v33  ;;  %v747_v39 = vld [vmem:[%s1964_s3 + $0x20] sm:$0xff]  ;;  %v748_v40 = vld [vmem:[%s1964_s3 + $0x28] sm:$0xff] }
  0x84   : > { %1340 = vmatpush3.bf16.msra.mxu0 %v1339_v53  ;;  %655 = vmatprep.mubr.f32.mxu0 %v320_v62  ;;  %v1373_v38 = vpack.c.bf16 %v746_v37, %v745_v35  ;;  %v1377_v41 = vpack.c.bf16 %v748_v40, %v747_v39  ;;  %v749_v42 = vld [vmem:[%s1964_s3 + $0x30] sm:$0xff]  ;;  %v750_v43 = vld [vmem:[%s1964_s3 + $0x38] sm:$0xff]  ;;  %v751_v45 = vld [vmem:[%s1964_s3 + $0x40] sm:$0xff] }
  0x85   : > { %586 = vmatmul.mubr.f32.gmra.mrb[2].mxu1 %v324_v59  ;;  %1342 = vmatprep.subr.bf16.mxu0 %v1341_v56  ;;  %v1381_v44 = vpack.c.bf16 %v750_v43, %v749_v42  ;;  %v752_v46 = vld [vmem:[%s1964_s3 + $0x48] sm:$0xff]  ;;  %v753_v48 = vld [vmem:[%s1964_s3 + $0x50] sm:$0xff]  ;;  %v754_v49 = vld [vmem:[%s1964_s3 + $0x58] sm:$0xff] }
  0x86   : > { %1212 = vmatprep.mubr.msk.f32.mxu1 %vm434_vm0, %v321_v63  ;;  %1370 = vmatprep.subr.bf16.mxu1 %v1369_v36  ;;  %v1385_v47 = vpack.c.bf16 %v752_v46, %v751_v45  ;;  %v1389_v50 = vpack.c.bf16 %v754_v49, %v753_v48  ;;  %v755_v51 = vld [vmem:[%s1964_s3 + $0x60] sm:$0xff]  ;;  %v756_v52 = vld [vmem:[%s1964_s3 + $0x68] sm:$0xff]  ;;  %v757_v54 = vld [vmem:[%s1964_s3 + $0x70] sm:$0xff] }
  0x87   : > { %v1393_v53 = vpack.c.bf16 %v756_v52, %v755_v51  ;;  %v758_v55 = vld [vmem:[%s1964_s3 + $0x78] sm:$0xff]  ;;  %v843_v57 = vld [vmem:[%s1966_s5] sm:$0xff]  ;;  %v844_v58 = vld [vmem:[%s1966_s5 + $0x8] sm:$0xff] }
  0x88   : > { %1344 = vmatpush3.bf16.msra.mxu0 %v1343_v0  ;;  %v1397_v56 = vpack.c.bf16 %v758_v55, %v757_v54  ;;  %v845_v59 = vld [vmem:[%s1966_s5 + $0x10] sm:$0xff]  ;;  %v1401_v60 = vpack.c.bf16 %v844_v58, %v843_v57  ;;  %v846_v61 = vld [vmem:[%s1966_s5 + $0x18] sm:$0xff]  ;;  %v847_v63 = vld [vmem:[%s1966_s5 + $0x20] sm:$0xff] }
  0x89   : > { %1213 = vmatmul.mubr.msk.f32.vlgmr.msra.gmra.mrb[4].mxu1 %vm434_vm0, %v328_v4  ;;  %1346 = vmatprep.subr.bf16.mxu0 %v1345_v1  ;;  %v1405_v62 = vpack.c.bf16 %v846_v61, %v845_v59  ;;  %v848_v0 = vld [vmem:[%s1966_s5 + $0x28] sm:$0xff]  ;;  %v1049_v3 = vld [vmem:[%s1963_s2] ss:$0 sm:$0xff]  ;;  %v849_v33 = vld [vmem:[%s1966_s5 + $0x30] sm:$0xff] }
  0x8a   : > { %1372 = vmatpush3.bf16.msra.mxu1 %v1369_v36  ;;  %v1409_v1 = vpack.c.bf16 %v848_v0, %v847_v63  ;;  %v850_v34 = vld [vmem:[%s1966_s5 + $0x38] sm:$0xff]  ;;  %v1052_v36 = vld [vmem:[%s1965_s4] ss:$0 sm:$0xff] }
  0x8b   : > { %1374 = vmatprep.subr.bf16.mxu1 %v1373_v38  ;;  %v1413_v35 = vpack.c.bf16 %v850_v34, %v849_v33  ;;  %v1053_v43 = vld [vmem:[%s1967_s6] ss:$0 sm:$0xff] }
  0x8c   : > { %1348 = vmatpush3.bf16.msra.mxu0 %v1347_v7 }
  0x8d   : > { %1350 = vmatprep.subr.bf16.mxu0 %v1349_v8 }
  0x8e   : > { %1376 = vmatpush3.bf16.msra.mxu1 %v1373_v38 }
  0x8f   : > { %1378 = vmatprep.subr.bf16.mxu1 %v1377_v41 }
  0x90   : > { %1352 = vmatpush3.bf16.msra.mxu0 %v1351_v13 }
  0x91   : > { %1354 = vmatprep.subr.bf16.mxu0 %v1353_v14 }
  0x92   : > { %1380 = vmatpush3.bf16.msra.mxu1 %v1377_v41 }
  0x93   : > { %1382 = vmatprep.subr.bf16.mxu1 %v1381_v44 }
  0x94   : > { %1356 = vmatpush3.bf16.msra.mxu0 %v1355_v19 }
  0x95   : > { %1358 = vmatprep.subr.bf16.mxu0 %v1357_v20 }
  0x96   : > { %1384 = vmatpush3.bf16.msra.mxu1 %v1381_v44 }
  0x97   : > { %1386 = vmatprep.subr.bf16.mxu1 %v1385_v47 }
  0x98   : > { %1360 = vmatpush3.bf16.msra.mxu0 %v1359_v25 }
  0x99   : > { %1362 = vmatprep.subr.bf16.mxu0 %v1361_v26 }
  0x9a   : > { %1388 = vmatpush3.bf16.msra.mxu1 %v1385_v47 }
  0x9b   : > { %1390 = vmatprep.subr.bf16.mxu1 %v1389_v50 }
  0x9c   : > { %1364 = vmatpush3.bf16.msra.mxu0 %v1363_v29 }
  0x9d   : > { %1402 = vmatprep.subr.bf16.mxu0 %v1401_v60 }
  0x9e   : > { %1392 = vmatpush3.bf16.msra.mxu1 %v1389_v50 }
  0x9f   : > { %656 = vmatmul.mubr.f32.vlgmr.msra.gmra.mrb[4].mxu0 %v319_v30  ;;  %1394 = vmatprep.subr.bf16.mxu1 %v1393_v53 }
  0xa0   : > { %660 = vmatprep.mubr.f32.mxu0 %v327_v31  ;;  %1404 = vmatpush3.bf16.msra.mxu0 %v1401_v60 }
  0xa1   : > { %1406 = vmatprep.subr.bf16.mxu0 %v1405_v62 }
  0xa2   : > { %1396 = vmatpush3.bf16.msra.mxu1 %v1393_v53 }
  0xa3   : > { %661 = vmatmul.mubr.f32.gmra.mrb[6].mxu0 %v326_v32  ;;  %1398 = vmatprep.subr.bf16.mxu1 %v1397_v56 }
  0xa4   : > { %1408 = vmatpush3.bf16.msra.mxu0 %v1405_v62 }
  0xa5   : > { %1410 = vmatprep.subr.bf16.mxu0 %v1409_v1 }
  0xa6   : > { %1400 = vmatpush3.bf16.msra.mxu1 %v1397_v56 }
  0xa8   : > { %1412 = vmatpush3.bf16.msra.mxu0 %v1409_v1 }
  0xa9   : > { %1414 = vmatprep.subr.bf16.mxu0 %v1413_v35 }
  0xac   : > { %1416 = vmatpush3.bf16.msra.mxu0 %v1413_v35 }
 0x152   : > { %v1094_v2 = vpop.f32.mrb[0].mxu0 }
 0x153   : > { %v1095_v4 = vpop.f32.mrb[1].mxu0 }
 0x154   : > { %v1132_v5 = vpop.f32.mrb[0].mxu1  ;;  %v1096_v6 = vadd.f32 %v1095_v4, %v1094_v2 }
 0x155   : > { %v1133_v7 = vpop.f32.mrb[1].mxu1 }
 0x156   : > { %v1134_v8 = vadd.f32 %v1133_v7, %v1132_v5  ;;  %v508_v9 = vadd.f32 %v1096_v6, %v1049_v3  ;;  %v1097_v10 = vpop.f32.mrb[2].mxu0 }
 0x157   : > { %v1098_v11 = vpop.f32.mrb[3].mxu0 }
 0x158   : > { %v1135_v12 = vpop.f32.mrb[2].mxu1  ;;  %v583_v13 = vadd.f32 %v1134_v8, %v508_v9  ;;  %v1099_v14 = vadd.f32 %v1098_v11, %v1097_v10 }
 0x159   : > { %v1136_v15 = vpop.f32.mrb[3].mxu1 }
 0x15a   : > { %v1137_v16 = vadd.f32 %v1136_v15, %v1135_v12  ;;  %v513_v17 = vadd.f32 %v1099_v14, %v1049_v3 }
 0x15c   : > { %v1214_v18 = vpop.f32.mrb[4].mxu1  ;;  %v588_v19 = vadd.f32 %v1137_v16, %v513_v17 }
 0x15d   : > { %v732_v20 = vpop.f32.mrb[5].mxu1 }
 0x172   : > { %v1170_v21 = vpop.f32.mrb[4].mxu0 }
 0x173   : > { %v1171_v22 = vpop.f32.mrb[5].mxu0 }
 0x174   : > { %v1172_v23 = vadd.f32 %v1171_v22, %v1170_v21 }
 0x176   : > { %v1173_v24 = vpop.f32.mrb[6].mxu0  ;;  %v658_v25 = vadd.f32 %v1172_v23, %v583_v13 }
 0x177   : > { %v1174_v26 = vpop.f32.mrb[7].mxu0 }
 0x178   : > { %v1175_v27 = vadd.f32 %v1174_v26, %v1173_v24  ;;  %v733_v28 = vadd.f32 %v732_v20, %v658_v25 }
 0x17a   : > { %v663_v29 = vadd.f32 %v1175_v27, %v588_v19  ;;  %v741_v30 = vmax.f32 %v733_v28, 0.0 }
 0x17c   : > { %v738_v31 = vadd.f32 %v1214_v18, %v663_v29  ;;  %1247 = vmatprep.mubr.f32.mxu1 %v741_v30 }
 0x17e   : > { %v742_v32 = vmax.f32 %v738_v31, 0.0 }
 0x180   : > { %1248 = vmatmul.mubr.f32.vlgmr.msra.gmra.mrb[6].mxu1 %v742_v32 }
 0x253   : > { %v1249_v37 = vpop.f32.mrb[6].mxu1 }
 0x254   : > { %v838_v38 = vadd.f32 %v1249_v37, %v1052_v36  ;;  %v832_v39 = vpop.f32.mrb[7].mxu1 }
 0x255   : > { %v833_v40 = vadd.f32 %v1052_v36, %v832_v39 }
 0x256   : > { %v842_v42 = vmax.f32 %v838_v38, 0.0 }
 0x257   : > { %v841_v41 = vmax.f32 %v833_v40, 0.0 }
 0x259   : > { %1266 = vmatprep.mubr.msk.f32.mxu0 %vm858_vm1, %v841_v41 }
 0x25a   : > { %1267 = vmatmul.mubr.msk.f32.vlgmr.msra.gmra.mrb[8].mxu0 %vm858_vm1, %v842_v42 }
 0x32d   : > { %v1268_v44 = vpop.f32.mrb[8].mxu0 }
 0x32e   : > { %v937_v45 = vadd.f32 %v1268_v44, %v1053_v43  ;;  %v931_v46 = vpop.f32.mrb[9].mxu0 }
 0x32f   : > { %v932_v47 = vadd.f32 %v1053_v43, %v931_v46 }
 0x330   : > { %941 = vst [vmem:[%s312_s12 + $0x8] sm:$0xff] %v937_v45 }
 0x331   : > { %940 = vst [vmem:[%s312_s12] sm:$0xff] %v932_v47 }
 0x332   : > { %1554 = shalt.err (!%p1551_p7)
}
 0x333   : > { %s1555_s10 = scalar_lea.hbm %s1917_s15, 256  ;;  %s1559_s20 = scalar_lea.hbm %s1968_s7, 512 }
 0x334   : > { %p1556_p9 = scmp.ne.s32.totalorder %s1917_s15, %s1555_s10  ;;  %p1560_p5 = scmp.lt.u32.totalorder %s1917_s15, %s1968_s7 }
 0x335   : > { %p1561_p11 = scmp.lt.u32.totalorder %s1559_s20, %s1555_s10  ;;  %p1563_p4 = scmp.lt.u32.totalorder %s1555_s10, %s1917_s15 }
 0x336   : > { %p1557_p2 = pnand %p1556_p9, %p1753_p12 }
 0x337   : > { %p1562_p1 = por %p1561_p11, %p1560_p5 }
 0x338   : > { %p1558_p0 = pneg %p1557_p2 }
 0x339   : > { %p1564_p6 = por %p1563_p4, %p1562_p1 }
 0x33b   : > { %p1565_p8 = pnand %p1564_p6, %p1558_p0 }
 0x33d   : > { %1568 = shalt.err (!%p1565_p8)
}
 0x33e   : > { %s1620_s16 = smov 128   ;;  %s1621_s11 = smov 8  }
 0x33f   : > { %1426 = dma.vmem_to_hbm [thread:$0]  (%p1753_p12), %s1912_s23, 256, %s1917_s15, %s943_s29, %s1620_s16, %s1620_s16, %s1621_s11  }
 0x340 PF: > { %s971_s22 = sand.u32 1, %s1599_s24   ;;  %p1985_p10 = scmp.ne.s32.totalorder %s1974_s8, 0 }
 0x341   : > { %p1986_p13 = scmp.ge.s32.totalorder %s1611_s27, 2  ;;  %s972_s28 = scalar_lea.sflag [#allocation4], %s971_s22 }
 0x343   : > { %p1437_p3 = pnand %p1986_p13, %p1985_p10 }
 0x345   : > { %1594 = dma.done.wait (!%p1437_p3), %s972_s28, 256  }
 0x346   : > { %1596 = vsyncadd (!%p1437_p3), %s972_s28, 4294967040  ;;  %p21_p7 = scmp.ge.s32.totalorder %s1718_s13, 4   ;;  %s1987_s24 = smov %s1603_s25 }
 0x347   : > { %s1988_s25 = smov %s1607_s26  ;;  %s1989_s26 = smov %s1749_s18 }
 0x348   : > { %s1990_s27 = smov %s1718_s13  ;;  %23 = sbr.rel (!%p21_p7) target bundleno = 8 (0x8), region = 97 }
 0x34f   :  { %977 = vsyncpa [#allocation3], 1 }
 0x350   :  { %979 = vsyncpa [#allocation3 + $0x1], 1 }
 0x351   :  { %980 = vsyncpa [#allocation6], 1 }
 0x352   :  { %981 = vsyncpa [#allocation4], 1 }
 0x353   :  { %983 = vsyncpa [#allocation4 + $0x1], 1 }

</bundles_post_ra>
